<compile_context>
chip_gen: v7x
topology: tpu7x:2x2x1
jax: 0.10.0
libtpu: 0.0.40
codegen_flags: <defaults>
</compile_context>

<pallas_src>
import math

import jax
import jax.numpy as jnp
from jax.experimental import pallas as pl
from jax.experimental.pallas import tpu as pltpu


def _scaling_kernel(x_ref, scale_ref, y_ref):
    # exp on the (1, td) scale row -> EUP slot; broadcast multiply -> VPU.
    e = jnp.exp(scale_ref[...])                       # (1, td)
    y_ref[...] = (x_ref[...] * e).astype(y_ref.dtype)  # (tb, td), explicit cast


def _tuning_for_device():
    """Pick (target_tile_bytes, vmem_limit_bytes or None) per TPU generation."""
    try:
        kind = jax.devices()[0].device_kind.lower()
    except Exception:
        kind = ""
    if ("v5 lite" in kind) or ("v5e" in kind) or ("v5lite" in kind):
        # v5e scoped-VMEM default is 16 MiB: 2 MiB tiles (8 MiB live) are safe,
        # and at 0.82 TB/s the per-step overhead is already small.
        return 2 << 20, None
    if "v7" in kind:
        # v7x: 2 TCs @ ~1.6 TB/s each; 8 MiB tiles amortize the ~0.35 us/step
        # cost to ~3%.  4x8 MiB live buffers need the scoped limit raised
        # (64 MiB physical per TC).
        return 8 << 20, 48 << 20
    # v6e (and default): 4 MiB tiles -> 16 MiB live, fits the 32 MiB default.
    return 4 << 20, None


def scaling_forward(x, scale, *, target_tile_bytes=None, vmem_limit_bytes=None):
    """x: (B, D), scale: (1, D) -> (y (B, D), log_det_J (1,))."""
    B, D = x.shape
    assert scale.shape == (1, D)

    # log|det J| = sum(scale, dim=1): trivial parameter reduction, keep it out
    # of the kernel (avoids a second masked (1,1) output stream).
    log_det = jnp.sum(scale, axis=1)  # shape (1,)

    if target_tile_bytes is None:
        target_tile_bytes, auto_vmem = _tuning_for_device()
        if vmem_limit_bytes is None:
            vmem_limit_bytes = auto_vmem

    itemsize = jnp.dtype(x.dtype).itemsize
    sub = max(8, 32 // itemsize)  # sublane multiple: 8 f32, 16 bf16, 32 int8/fp8

    # ---- lane-dense repacking (pure layout plumbing) ------------------------
    # Row width W = lcm(D, 128); fold k = W // D rows into one lane-dense row.
    W = (D * 128) // math.gcd(D, 128)
    k = W // D
    r = (-B) % k  # padding rows needed so B + r is a multiple of k
    if k > 1 and r <= B:  # pad at most doubles rows; typically r << B
        x_work = jnp.pad(x, ((0, r), (0, 0))) if r else x
        Bp, Dp = (B + r) // k, W
        x_p = x_work.reshape(Bp, Dp)
        scale_p = jnp.tile(scale, (1, k))  # (1, Dp)
    else:
        k, r = 1, 0
        Bp, Dp = B, D
        x_p = x
        scale_p = scale

    # ---- column tile (only when a minimal sublane stripe exceeds the target) -
    if sub * Dp * itemsize > target_tile_bytes and Dp >= 256:
        td = max(128, (target_tile_bytes // (sub * itemsize)) // 128 * 128)
        td = min(td, Dp)
    else:
        td = Dp

    # ---- row tile: fill the per-step byte budget, dtype-aware rounding ------
    tb = max(sub, (target_tile_bytes // max(td * itemsize, 1)) // sub * sub)
    tb = min(tb, Bp)
    # Ensure >= 2 row steps when possible so the "parallel" axis can shard
    # across both TensorCores on v7x (harmless elsewhere).
    if tb >= Bp and Bp >= 2 * sub and pl.cdiv(Dp, td) == 1:
        tb = max(sub, (Bp // 2) // sub * sub)

    grid = (pl.cdiv(Bp, tb), pl.cdiv(Dp, td))

    cp_kwargs = dict(dimension_semantics=("parallel", "parallel"))
    if vmem_limit_bytes is not None:
        cp_kwargs["vmem_limit_bytes"] = int(vmem_limit_bytes)

    y_p = pl.pallas_call(
        _scaling_kernel,
        out_shape=jax.ShapeDtypeStruct((Bp, Dp), x.dtype),
        grid=grid,
        in_specs=[
            pl.BlockSpec((tb, td), lambda i, j: (i, j)),
            # row index fixed at 0 -> scale row stays VMEM-resident per column
            pl.BlockSpec((1, td), lambda i, j: (0, j)),
        ],
        out_specs=pl.BlockSpec((tb, td), lambda i, j: (i, j)),
        compiler_params=pltpu.CompilerParams(**cp_kwargs),
    )(x_p, scale_p)

    if k > 1:
        y = y_p.reshape(Bp * k, D)[:B]
    else:
        y = y_p
    return y, log_det


if __name__ == "__main__":
    key = jax.random.PRNGKey(0)

    # --- case 1: D < 128, B divisible by k (exercises exact lane repack) -----
    B, D = 8, 32
    kx, ks, kx2, ks2, kx3, ks3 = jax.random.split(key, 6)
    x = jax.random.normal(kx, (B, D), dtype=jnp.float32)
    scale = 0.1 * jax.random.normal(ks, (1, D), dtype=jnp.float32)

    y, log_det = scaling_forward(x, scale)
    jax.block_until_ready((y, log_det))

    y_ref = x * jnp.exp(scale)
    ld_ref = jnp.sum(scale, axis=1)
    assert y.shape == (B, D) and log_det.shape == (1,)
    assert jnp.allclose(y, y_ref, atol=1e-6)
    assert jnp.allclose(log_det, ld_ref, atol=1e-6)

    # --- case 2: B not divisible by k (exercises the row-padding path) -------
    B2, D2 = 10, 48  # lcm(48,128)=384 -> k=8, pad 6 rows
    x2 = jax.random.normal(kx2, (B2, D2), dtype=jnp.float32)
    scale2 = 0.05 * jax.random.normal(ks2, (1, D2), dtype=jnp.float32)
    y2, ld2 = scaling_forward(x2, scale2)
    jax.block_until_ready((y2, ld2))
    assert y2.shape == (B2, D2)
    assert jnp.allclose(y2, x2 * jnp.exp(scale2), atol=1e-6)
    assert jnp.allclose(ld2, jnp.sum(scale2, axis=1), atol=1e-6)

    # --- case 3: bf16 (exercises dtype-aware sublane rounding + explicit cast)
    B3, D3 = 32, 64
    x3 = jax.random.normal(kx3, (B3, D3), dtype=jnp.float32).astype(jnp.bfloat16)
    scale3 = (0.1 * jax.random.normal(ks3, (1, D3), dtype=jnp.float32)).astype(
        jnp.bfloat16)
    y3, ld3 = scaling_forward(x3, scale3)
    jax.block_until_ready((y3, ld3))
    y3_ref = (x3.astype(jnp.float32) * jnp.exp(scale3.astype(jnp.float32)))
    assert y3.shape == (B3, D3) and y3.dtype == jnp.bfloat16
    assert jnp.allclose(y3.astype(jnp.float32), y3_ref, atol=2e-2, rtol=2e-2)

    print("KERNEL_OK")
</pallas_src>

<mosaic_0001>
module attributes {stable_mosaic.version = 11 : i64} {
  func.func @_scaling_kernel(%arg0: i32, %arg1: i32, %arg2: memref<2x128xf32, #tpu.memory_space<vmem>>, %arg3: memref<1x128xf32, #tpu.memory_space<vmem>>, %arg4: memref<2x128xf32, #tpu.memory_space<vmem>>) attributes {dimension_semantics = [#tpu.dimension_semantics<parallel>, #tpu.dimension_semantics<parallel>], iteration_bounds = array<i64: 1, 1>, scalar_prefetch = 0 : i64, scratch_operands = 0 : i64, tpu.core_type = #tpu.core_type<tc>, window_params = [{transform_indices = @transform_0, window_bounds = array<i64: 2, 128>}, {transform_indices = @transform_1, window_bounds = array<i64: 1, 128>}, {transform_indices = @transform_2, window_bounds = array<i64: 2, 128>}]} {
    %c0 = arith.constant 0 : index
    %c0_0 = arith.constant 0 : index
    %0 = vector.load %arg3[%c0, %c0_0] : memref<1x128xf32, #tpu.memory_space<vmem>>, vector<1x128xf32>
    %1 = math.exp %0 : vector<1x128xf32>
    %c0_1 = arith.constant 0 : index
    %c0_2 = arith.constant 0 : index
    %2 = vector.load %arg2[%c0_1, %c0_2] : memref<2x128xf32, #tpu.memory_space<vmem>>, vector<2x128xf32>
    %3 = vector.broadcast %1 : vector<1x128xf32> to vector<2x128xf32>
    %4 = arith.mulf %2, %3 : vector<2x128xf32>
    %c0_3 = arith.constant 0 : index
    %c0_4 = arith.constant 0 : index
    %5 = vector.load %arg4[%c0_3, %c0_4] : memref<2x128xf32, #tpu.memory_space<vmem>>, vector<2x128xf32>
    tpu.vector_store %arg4[%c0_3, %c0_4], %4 {strides = array<i32>} : memref<2x128xf32, #tpu.memory_space<vmem>>, vector<2x128xf32>,
    return
  }
  func.func @transform_0(%arg0: i32, %arg1: i32) -> (i32, i32) {
    %c0_i32 = arith.constant 0 : i32
    return %arg0, %arg1 : i32, i32
  }
  func.func @transform_1(%arg0: i32, %arg1: i32) -> (i32, i32) {
    %c0_i32 = arith.constant 0 : i32
    %c0_i32_0 = arith.constant 0 : i32
    return %c0_i32, %arg1 : i32, i32
  }
  func.func @transform_2(%arg0: i32, %arg1: i32) -> (i32, i32) {
    %c0_i32 = arith.constant 0 : i32
    return %arg0, %arg1 : i32, i32
  }
}

</mosaic_0001>

<bundles_post_ra>
// kernel: tpu_custom_call.1
= control target key start
LH: loop header
LB: loop body
LE: loop exit
PB: predicated region body
PF: predicated region fallthrough
CT: control target
= control target key end

     0   :  { %7 = vsyncpa [#allocation3], 0  ;;  %s147_s0 = inlined_call_operand.hbm [shape: f32[2,128], index: 0, kind: input, shape index: {}]   ;;  %s148_s1 = inlined_call_operand.vmem [shape: f32[1,128], index: 1, kind: input, shape index: {}]   ;;  %s149_s2 = inlined_call_operand.hbm [shape: f32[2,128], index: 2, kind: output, shape index: {}]  }
   0x1   :  { %8 = vsyncpa [#allocation4], 0  ;;  %s103_s9 = smov [#allocation2]   ;;  %s55_s13 = scalar_lea.hbm %s147_s0, 32 }
   0x2   :  { %s15_s10 = sshll.u32 %s103_s9, 4  ;;  %p56_p0 = scmp.ne.s32.totalorder %s147_s0, %s55_s13  ;;  %s16_s10 = int_to_ptr.vmem [resolvable:$true] %s15_s10 }
   0x3   :  { %p59_p1 = scmp.lt.u32.totalorder %s55_s13, %s147_s0 }
   0x5   :  { %p61_p2 = pnand %p59_p1, %p56_p0 }
   0x7   :  { %64 = shalt.err (!%p61_p2)
}
   0x8   :  { %s65_s18 = scalar_lea.vmem %s16_s10, 32  ;;  %p70_p4 = scmp.lt.s32.totalorder %s16_s10, %s16_s10 }
   0x9   :  { %p66_p3 = scmp.ne.s32.totalorder %s16_s10, %s65_s18  ;;  %p71_p5 = scmp.lt.s32.totalorder %s65_s18, %s65_s18 }
   0xb   :  { %p72_p6 = por %p71_p5, %p70_p4 }
   0xd   :  { %p73_p7 = pnand %p72_p6, %p66_p3 }
   0xf   :  { %76 = shalt.err (!%p73_p7)
}
  0x10   :  { %18 = dma.hbm_to_vmem [thread:$0]  %s147_s0, 32, %s16_s10, [#allocation3]  }
  0x11   :  { %99 = dma.done.wait [#allocation3], 32  }
  0x12   :  { %100 = vsyncadd [#allocation3], 4294967264  ;;  %v24_v0 = vld [vmem:[%s148_s1] sm:$0x1]  ;;  %v29_v2 = vlaneseq  ;;  %s104_s23 = smov [#allocation5]  }
  0x13   :  { %v25_v1 = vmul.f32 1.442695, %v24_v0  ;;  %v27_v6 = vld [vmem:[#allocation2] sm:$0x3]  ;;  %s42_s24 = sshll.u32 %s104_s23, 4  ;;  %s43_s24 = int_to_ptr.vmem [resolvable:$true] %s42_s24 }
  0x14   :  { %v30_v3 = vshrl.u32 %v29_v2, 7  ;;  %s77_s0 = scalar_lea.vmem %s43_s24, 32  ;;  %p82_p9 = scmp.lt.s32.totalorder %s43_s24, %s43_s24 }
  0x15   :  { %53 = vpow2.f32 %v25_v1  ;;  %p78_p8 = scmp.ne.s32.totalorder %s43_s24, %s77_s0  ;;  %p83_p10 = scmp.lt.s32.totalorder %s77_s0, %s77_s0 }
  0x16   :  { %v31_v4 = vsub.s32 0, %v30_v3 }
  0x17   :  { %p84_p11 = por %p83_p10, %p82_p9 }
  0x19   :  { %p85_p12 = pnand %p84_p11, %p78_p8 }
  0x1f   :  { %v54_v5 = vpop.eup %53 }
  0x20   :  { %v32_v7 = vrot.slane %v54_v5, %v31_v4 }
  0x22   :  { %v34_v8 = vmul.f32 %v32_v7, %v27_v6 }
  0x24   :  { %35 = vst [vmem:[#allocation5] sm:$0x3] %v34_v8 }
  0x25   :  { %88 = shalt.err (!%p85_p12)
}
  0x26   :  { %s89_s26 = scalar_lea.hbm %s149_s2, 32 }
  0x27   :  { %p90_p13 = scmp.ne.s32.totalorder %s149_s2, %s89_s26  ;;  %p93_p0 = scmp.lt.u32.totalorder %s89_s26, %s149_s2 }
  0x29   :  { %p95_p1 = pnand %p93_p0, %p90_p13 }
  0x2b   :  { %98 = shalt.err (!%p95_p1)
}
  0x2c   :  { %45 = dma.vmem_to_hbm [thread:$0]  %s43_s24, 32, %s149_s2, [#allocation4]  }
  0x2d   :  { %101 = dma.done.wait [#allocation4], 32  }
  0x2e   :  { %102 = vsyncadd [#allocation4], 4294967264 }
  0x2f   :  { %49 = vsyncpa [#allocation3], 1 }
  0x30   :  { %50 = vsyncpa [#allocation4], 1 }

</bundles_post_ra>
